<compile_context>
chip_gen: v7x
topology: tpu7x:2x2x1
jax: 0.10.0
libtpu: 0.0.40
codegen_flags: <defaults>
</compile_context>

<pallas_src>
import functools

import jax
import jax.numpy as jnp
from jax.experimental import pallas as pl
from jax.experimental.pallas import tpu as pltpu

_LN_EPS = 1e-5  # nn.LayerNorm default


def _ln_silu(h, gamma, beta):
    """LayerNorm (biased variance, affine) followed by SiLU — all in f32."""
    mu = jnp.mean(h, axis=-1, keepdims=True)
    var = jnp.mean((h - mu) ** 2, axis=-1, keepdims=True)
    hn = (h - mu) * jax.lax.rsqrt(var + _LN_EPS)
    hn = hn * gamma + beta
    return hn * jax.nn.sigmoid(hn)


def expander_block_kernel(coeff_ref, x_ref,
                          w1e_ref, b1e_ref, ge_ref, bee_ref, w2e_ref, b2e_ref,
                          w1d_ref, b1d_ref, gd_ref, bd_ref, w2bd_ref, b2c_ref,
                          o_ref, *, n_out, hid, matmul_dtype):
    """Whole ExpanderBlock (encoder + all decoder branches) for one batch tile.

    coeff_ref is in SMEM (scalar path); everything else is VMEM-resident.
    The output is one lane-dense (batch_tile, out_pad) slab holding the
    concatenated (zero-padded to a multiple of 128 lanes) branch outputs.
    """
    x = x_ref[...]

    # -------- encoder HiddenBlock(depth=0): Linear -> LayerNorm -> SiLU -> Linear --
    h = jnp.dot(x.astype(matmul_dtype), w1e_ref[...].astype(matmul_dtype),
                preferred_element_type=jnp.float32) + b1e_ref[...]
    h = _ln_silu(h, ge_ref[...], bee_ref[...])
    # TODO(synk): Dropout omitted (identity in eval mode); training-mode dropout
    # would use pltpu.prng_seed / pltpu.prng_random_bits here.
    h = jnp.dot(h.astype(matmul_dtype), w2e_ref[...].astype(matmul_dtype),
                preferred_element_type=jnp.float32) + b2e_ref[...]   # (bt, n_out*hid)

    # -------- decoder branches (statically unrolled), all inside the same kernel ---
    w2bd = w2bd_ref[...]                        # (n_out*hid, out_pad) block-"diagonal"
    y = None
    for i in range(n_out):
        c = coeff_ref[0, i]                     # SMEM scalar read (free)
        hi = h[:, i * hid:(i + 1) * hid] * c    # static slice of the contiguous slab
        t = jnp.dot(hi.astype(matmul_dtype), w1d_ref[i].astype(matmul_dtype),
                    preferred_element_type=jnp.float32) + b1d_ref[i]
        t = _ln_silu(t, gd_ref[i], bd_ref[i])
        # Branch output Linear lands in this branch's column range of the
        # lane-dense output via its (zero-padded) row block of the packed W2.
        part = jnp.dot(t.astype(matmul_dtype),
                       w2bd[i * hid:(i + 1) * hid, :].astype(matmul_dtype),
                       preferred_element_type=jnp.float32)
        y = part if y is None else y + part
    y = y + b2c_ref[...]
    o_ref[...] = y.astype(o_ref.dtype)          # single full-width (128-lane) store


# ------------------------------- host-side wrapper ----------------------------------

def _round_up(v, m):
    return (v + m - 1) // m * m


def pack_expander_params(enc_params, dec_params_list, lane=128):
    """One-time packing of the decoder weights for the fused kernel."""
    n_out = len(dec_params_list)
    hid = dec_params_list[0][0].shape[0]
    out_dims = tuple(p[4].shape[1] for p in dec_params_list)
    out_pad = _round_up(sum(out_dims), lane)    # lane-dense, unmasked output stores

    w1d = jnp.stack([p[0] for p in dec_params_list])    # (n_out, hid, hid)
    b1d = jnp.stack([p[1] for p in dec_params_list])    # (n_out, 1, hid)
    gd = jnp.stack([p[2] for p in dec_params_list])     # (n_out, 1, hid)
    bd = jnp.stack([p[3] for p in dec_params_list])     # (n_out, 1, hid)

    # Block-diagonal second Linear: branch i's (hid, out_i) goes in rows
    # [i*hid, (i+1)*hid) and its own column range of the concatenated output.
    w2bd = jnp.zeros((n_out * hid, out_pad), jnp.float32)
    b2c = jnp.zeros((1, out_pad), jnp.float32)
    off = 0
    for i, p in enumerate(dec_params_list):
        w2, b2 = p[4], p[5]
        od = w2.shape[1]
        w2bd = w2bd.at[i * hid:(i + 1) * hid, off:off + od].set(w2)
        b2c = b2c.at[:, off:off + od].set(b2)
        off += od

    return dict(enc=enc_params, w1d=w1d, b1d=b1d, gd=gd, bd=bd,
                w2bd=w2bd, b2c=b2c, out_dims=out_dims,
                n_out=n_out, hid=hid, out_pad=out_pad)


def expander_block(x, coeffs, packed, *, matmul_dtype=jnp.float32, batch_tile=8):
    """ExpanderBlock.forward — one fused pallas_call. Returns list of (B, out_i)."""
    n_out, hid, out_pad = packed["n_out"], packed["hid"], packed["out_pad"]
    w1e, b1e, ge, bee, w2e, b2e = packed["enc"]
    batch, in_dim = x.shape

    if coeffs is None:
        coeffs2d = jnp.ones((1, n_out), jnp.float32)
    else:
        coeffs2d = jnp.asarray(coeffs, jnp.float32).reshape(1, n_out)

    # Pad the batch (sublane) dim to a multiple of the tile (>= 8 for f32).
    b_pad = _round_up(max(batch, batch_tile), batch_tile)
    if b_pad != batch:
        x = jnp.pad(x, ((0, b_pad - batch), (0, 0)))

    kernel = functools.partial(expander_block_kernel, n_out=n_out, hid=hid,
                               matmul_dtype=matmul_dtype)

    def resident(arr):
        zeros = (0,) * arr.ndim
        return pl.BlockSpec(arr.shape, lambda b: zeros)  # stays in VMEM for all tiles

    y = pl.pallas_call(
        kernel,
        out_shape=jax.ShapeDtypeStruct((b_pad, out_pad), x.dtype),
        grid=(b_pad // batch_tile,),
        in_specs=[
            # coeffs on the scalar path
            pl.BlockSpec((1, n_out), lambda b: (0, 0),
                         memory_space=pltpu.MemorySpace.SMEM),
            # activations: tiled over the batch grid axis
            pl.BlockSpec((batch_tile, in_dim), lambda b: (b, 0)),
            # weights: whole arrays, resident across all batch tiles
            resident(w1e), resident(b1e), resident(ge), resident(bee),
            resident(w2e), resident(b2e),
            resident(packed["w1d"]), resident(packed["b1d"]),
            resident(packed["gd"]), resident(packed["bd"]),
            resident(packed["w2bd"]), resident(packed["b2c"]),
        ],
        out_specs=pl.BlockSpec((batch_tile, out_pad), lambda b: (b, 0)),
        compiler_params=pltpu.CompilerParams(
            # batch tiles are independent -> megacore-parallel on v7x
            dimension_semantics=("parallel",)),
    )(coeffs2d, x,
      w1e, b1e, ge, bee, w2e, b2e,
      packed["w1d"], packed["b1d"], packed["gd"], packed["bd"],
      packed["w2bd"], packed["b2c"])

    # Split the lane-dense slab back into the per-branch output list.
    outs, off = [], 0
    for od in packed["out_dims"]:
        outs.append(y[:batch, off:off + od])
        off += od
    return outs


# ----------------------------- parameter setup --------------------------------------

def _init_hidden_block_params(key, in_dim, hid_dim, out_dim):
    k1, k2, k3, k4 = jax.random.split(key, 4)
    scale1 = 1.0 / jnp.sqrt(jnp.float32(in_dim))
    scale2 = 1.0 / jnp.sqrt(jnp.float32(hid_dim))
    w1 = jax.random.uniform(k1, (in_dim, hid_dim), jnp.float32, -scale1, scale1)
    b1 = jax.random.uniform(k2, (1, hid_dim), jnp.float32, -scale1, scale1)
    gamma = jnp.ones((1, hid_dim), jnp.float32)
    beta = jnp.zeros((1, hid_dim), jnp.float32)
    w2 = jax.random.uniform(k3, (hid_dim, out_dim), jnp.float32, -scale2, scale2)
    b2 = jax.random.uniform(k4, (1, out_dim), jnp.float32, -scale2, scale2)
    return (w1, b1, gamma, beta, w2, b2)


# ------------------------------ pure-JAX reference -----------------------------------

def _hidden_block_ref(x, params, coeff=None):
    w1, b1, gamma, beta, w2, b2 = params
    if coeff is not None:
        x = x * coeff
    h = x @ w1 + b1
    mu = jnp.mean(h, axis=-1, keepdims=True)
    var = jnp.mean((h - mu) ** 2, axis=-1, keepdims=True)
    hn = (h - mu) / jnp.sqrt(var + _LN_EPS) * gamma + beta
    hs = hn * jax.nn.sigmoid(hn)
    return hs @ w2 + b2


def _expander_block_ref(x, coeffs, enc_params, dec_params_list):
    n_out = len(dec_params_list)
    h = _hidden_block_ref(x, enc_params)
    h = h.reshape(x.shape[0], n_out, -1)
    if coeffs is not None:
        h = h * coeffs[None, :, None]
    return [_hidden_block_ref(h[:, i, :], p) for i, p in enumerate(dec_params_list)]


# ----------------------------------- main --------------------------------------------

if __name__ == "__main__":
    key = jax.random.PRNGKey(0)

    batch = 4
    input_dim = 32
    output_dim_list = [16, 24]
    hidden_dim = min(output_dim_list)          # ExpanderBlock default
    n_out = len(output_dim_list)

    k_x, k_c, k_enc, *k_dec = jax.random.split(key, 3 + n_out)

    x = jax.random.normal(k_x, (batch, input_dim), jnp.float32)
    coeffs = jax.random.uniform(k_c, (n_out,), jnp.float32)

    enc_params = _init_hidden_block_params(
        k_enc, input_dim, hidden_dim, hidden_dim * n_out)
    dec_params_list = [
        _init_hidden_block_params(k_dec[i], hidden_dim, hidden_dim, output_dim_list[i])
        for i in range(n_out)
    ]

    packed = pack_expander_params(enc_params, dec_params_list)

    # On v6e/v7x, pass matmul_dtype=jnp.bfloat16 for full-rate MXU; keep f32 on v5e.
    outs = expander_block(x, coeffs, packed, matmul_dtype=jnp.float32)
    outs = [jax.block_until_ready(o) for o in outs]

    # sanity-check against the pure-JAX reference
    refs = _expander_block_ref(x, coeffs, enc_params, dec_params_list)
    for o, r, od in zip(outs, refs, output_dim_list):
        assert o.shape == (batch, od), (o.shape, (batch, od))
        assert jnp.allclose(o, r, atol=1e-4, rtol=1e-4), "mismatch vs reference"

    print("KERNEL_OK")
</pallas_src>

<mosaic_0001>
module attributes {stable_mosaic.version = 11 : i64} {
  func.func @expander_block_kernel(%arg0: i32, %arg1: memref<1x2xf32, #tpu.memory_space<smem>>, %arg2: memref<8x32xf32, #tpu.memory_space<vmem>>, %arg3: memref<32x16xf32, #tpu.memory_space<vmem>>, %arg4: memref<1x16xf32, #tpu.memory_space<vmem>>, %arg5: memref<1x16xf32, #tpu.memory_space<vmem>>, %arg6: memref<1x16xf32, #tpu.memory_space<vmem>>, %arg7: memref<16x32xf32, #tpu.memory_space<vmem>>, %arg8: memref<1x32xf32, #tpu.memory_space<vmem>>, %arg9: memref<2x16x16xf32, #tpu.memory_space<vmem>>, %arg10: memref<2x1x16xf32, #tpu.memory_space<vmem>>, %arg11: memref<2x1x16xf32, #tpu.memory_space<vmem>>, %arg12: memref<2x1x16xf32, #tpu.memory_space<vmem>>, %arg13: memref<32x128xf32, #tpu.memory_space<vmem>>, %arg14: memref<1x128xf32, #tpu.memory_space<vmem>>, %arg15: memref<8x128xf32, #tpu.memory_space<vmem>>) attributes {dimension_semantics = [#tpu.dimension_semantics<parallel>], iteration_bounds = array<i64: 1>, scalar_prefetch = 0 : i64, scratch_operands = 0 : i64, tpu.core_type = #tpu.core_type<tc>, window_params = [{transform_indices = @transform_0, window_bounds = array<i64: 1, 2>}, {transform_indices = @transform_1, window_bounds = array<i64: 8, 32>}, {pipeline_mode = #tpu.pipeline_mode<synchronous>, transform_indices = @transform_2, window_bounds = array<i64: 32, 16>}, {pipeline_mode = #tpu.pipeline_mode<synchronous>, transform_indices = @transform_3, window_bounds = array<i64: 1, 16>}, {pipeline_mode = #tpu.pipeline_mode<synchronous>, transform_indices = @transform_4, window_bounds = array<i64: 1, 16>}, {pipeline_mode = #tpu.pipeline_mode<synchronous>, transform_indices = @transform_5, window_bounds = array<i64: 1, 16>}, {pipeline_mode = #tpu.pipeline_mode<synchronous>, transform_indices = @transform_6, window_bounds = array<i64: 16, 32>}, {pipeline_mode = #tpu.pipeline_mode<synchronous>, transform_indices = @transform_7, window_bounds = array<i64: 1, 32>}, {pipeline_mode = #tpu.pipeline_mode<synchronous>, transform_indices = @transform_8, window_bounds = array<i64: 2, 16, 16>}, {pipeline_mode = #tpu.pipeline_mode<synchronous>, transform_indices = @transform_9, window_bounds = array<i64: 2, 1, 16>}, {pipeline_mode = #tpu.pipeline_mode<synchronous>, transform_indices = @transform_10, window_bounds = array<i64: 2, 1, 16>}, {pipeline_mode = #tpu.pipeline_mode<synchronous>, transform_indices = @transform_11, window_bounds = array<i64: 2, 1, 16>}, {pipeline_mode = #tpu.pipeline_mode<synchronous>, transform_indices = @transform_12, window_bounds = array<i64: 32, 128>}, {pipeline_mode = #tpu.pipeline_mode<synchronous>, transform_indices = @transform_13, window_bounds = array<i64: 1, 128>}, {transform_indices = @transform_14, window_bounds = array<i64: 8, 128>}]} {
    %c0 = arith.constant 0 : index
    %c0_0 = arith.constant 0 : index
    %0 = vector.load %arg2[%c0, %c0_0] : memref<8x32xf32, #tpu.memory_space<vmem>>, vector<8x32xf32>
    %c0_1 = arith.constant 0 : index
    %c0_2 = arith.constant 0 : index
    %1 = vector.load %arg3[%c0_1, %c0_2] : memref<32x16xf32, #tpu.memory_space<vmem>>, vector<32x16xf32>
    %cst = arith.constant dense<0.000000e+00> : vector<8x16xf32>
    %2 = tpu.matmul %0, %1, %cst {dimension_numbers = #tpu.dot_dimension_numbers<[1], [0], [0], [1], [0, 0, 1, 1], [], []>} : vector<8x32xf32>, vector<32x16xf32>, vector<8x16xf32> -> vector<8x16xf32>
    %c0_3 = arith.constant 0 : index
    %c0_4 = arith.constant 0 : index
    %3 = vector.load %arg4[%c0_3, %c0_4] : memref<1x16xf32, #tpu.memory_space<vmem>>, vector<1x16xf32>
    %4 = vector.broadcast %3 : vector<1x16xf32> to vector<8x16xf32>
    %5 = arith.addf %2, %4 : vector<8x16xf32>
    %c0_5 = arith.constant 0 : index
    %c0_6 = arith.constant 0 : index
    %6 = vector.load %arg5[%c0_5, %c0_6] : memref<1x16xf32, #tpu.memory_space<vmem>>, vector<1x16xf32>
    %c0_7 = arith.constant 0 : index
    %c0_8 = arith.constant 0 : index
    %7 = vector.load %arg6[%c0_7, %c0_8] : memref<1x16xf32, #tpu.memory_space<vmem>>, vector<1x16xf32>
    %cst_9 = arith.constant dense<0.000000e+00> : vector<8xf32>
    %8 = vector.multi_reduction <add>, %5, %cst_9 [1] : vector<8x16xf32> to vector<8xf32>
    %9 = vector.shape_cast %8 : vector<8xf32> to vector<8x1xf32>
    %cst_10 = arith.constant 1.600000e+01 : f32
    %10 = vector.broadcast %cst_10 : f32 to vector<8x1xf32>
    %11 = arith.divf %9, %10 : vector<8x1xf32>
    %12 = vector.broadcast %11 : vector<8x1xf32> to vector<8x16xf32>
    %13 = arith.subf %5, %12 : vector<8x16xf32>
    %14 = arith.mulf %13, %13 : vector<8x16xf32>
    %cst_11 = arith.constant dense<0.000000e+00> : vector<8xf32>
    %15 = vector.multi_reduction <add>, %14, %cst_11 [1] : vector<8x16xf32> to vector<8xf32>
    %16 = vector.shape_cast %15 : vector<8xf32> to vector<8x1xf32>
    %cst_12 = arith.constant 1.600000e+01 : f32
    %17 = vector.broadcast %cst_12 : f32 to vector<8x1xf32>
    %18 = arith.divf %16, %17 : vector<8x1xf32>
    %19 = vector.broadcast %11 : vector<8x1xf32> to vector<8x16xf32>
    %20 = arith.subf %5, %19 : vector<8x16xf32>
    %cst_13 = arith.constant 9.99999974E-6 : f32
    %21 = vector.broadcast %cst_13 : f32 to vector<8x1xf32>
    %22 = arith.addf %18, %21 : vector<8x1xf32>
    %23 = math.rsqrt %22 : vector<8x1xf32>
    %24 = vector.broadcast %23 : vector<8x1xf32> to vector<8x16xf32>
    %25 = arith.mulf %20, %24 : vector<8x16xf32>
    %26 = vector.broadcast %6 : vector<1x16xf32> to vector<8x16xf32>
    %27 = arith.mulf %25, %26 : vector<8x16xf32>
    %28 = vector.broadcast %7 : vector<1x16xf32> to vector<8x16xf32>
    %29 = arith.addf %27, %28 : vector<8x16xf32>
    %30 = arith.negf %29 : vector<8x16xf32>
    %31 = math.exp %30 : vector<8x16xf32>
    %cst_14 = arith.constant 1.000000e+00 : f32
    %32 = vector.broadcast %cst_14 : f32 to vector<8x16xf32>
    %33 = arith.addf %32, %31 : vector<8x16xf32>
    %34 = arith.divf %32, %33 : vector<8x16xf32>
    %35 = arith.mulf %29, %34 : vector<8x16xf32>
    %c0_15 = arith.constant 0 : index
    %c0_16 = arith.constant 0 : index
    %36 = vector.load %arg7[%c0_15, %c0_16] : memref<16x32xf32, #tpu.memory_space<vmem>>, vector<16x32xf32>
    %cst_17 = arith.constant dense<0.000000e+00> : vector<8x32xf32>
    %37 = tpu.matmul %35, %36, %cst_17 {dimension_numbers = #tpu.dot_dimension_numbers<[1], [0], [0], [1], [0, 0, 1, 1], [], []>} : vector<8x16xf32>, vector<16x32xf32>, vector<8x32xf32> -> vector<8x32xf32>
    %c0_18 = arith.constant 0 : index
    %c0_19 = arith.constant 0 : index
    %38 = vector.load %arg8[%c0_18, %c0_19] : memref<1x32xf32, #tpu.memory_space<vmem>>, vector<1x32xf32>
    %39 = vector.broadcast %38 : vector<1x32xf32> to vector<8x32xf32>
    %40 = arith.addf %37, %39 : vector<8x32xf32>
    %c0_20 = arith.constant 0 : index
    %c0_21 = arith.constant 0 : index
    %41 = vector.load %arg13[%c0_20, %c0_21] : memref<32x128xf32, #tpu.memory_space<vmem>>, vector<32x128xf32>
    %c0_22 = arith.constant 0 : index
    %c0_23 = arith.constant 0 : index
    %42 = memref.load %arg1[%c0_22, %c0_23] : memref<1x2xf32, #tpu.memory_space<smem>>
    %43 = vector.extract_strided_slice %40 {offsets = [0, 0], sizes = [8, 16], strides = [1, 1]} : vector<8x32xf32> to vector<8x16xf32>
    %44 = vector.broadcast %42 : f32 to vector<8x16xf32>
    %45 = arith.mulf %43, %44 : vector<8x16xf32>
    %c0_24 = arith.constant 0 : index
    %c0_25 = arith.constant 0 : index
    %c0_26 = arith.constant 0 : index
    %46 = vector.load %arg9[%c0_24, %c0_25, %c0_26] : memref<2x16x16xf32, #tpu.memory_space<vmem>>, vector<1x16x16xf32>
    %47 = vector.shape_cast %46 : vector<1x16x16xf32> to vector<16x16xf32>
    %cst_27 = arith.constant dense<0.000000e+00> : vector<8x16xf32>
    %48 = tpu.matmul %45, %47, %cst_27 {dimension_numbers = #tpu.dot_dimension_numbers<[1], [0], [0], [1], [0, 0, 1, 1], [], []>} : vector<8x16xf32>, vector<16x16xf32>, vector<8x16xf32> -> vector<8x16xf32>
    %c0_28 = arith.constant 0 : index
    %c0_29 = arith.constant 0 : index
    %c0_30 = arith.constant 0 : index
    %49 = vector.load %arg10[%c0_28, %c0_29, %c0_30] : memref<2x1x16xf32, #tpu.memory_space<vmem>>, vector<1x1x16xf32>
    %50 = vector.shape_cast %49 : vector<1x1x16xf32> to vector<1x16xf32>
    %51 = vector.broadcast %50 : vector<1x16xf32> to vector<8x16xf32>
    %52 = arith.addf %48, %51 : vector<8x16xf32>
    %c0_31 = arith.constant 0 : index
    %c0_32 = arith.constant 0 : index
    %c0_33 = arith.constant 0 : index
    %53 = vector.load %arg11[%c0_31, %c0_32, %c0_33] : memref<2x1x16xf32, #tpu.memory_space<vmem>>, vector<1x1x16xf32>
    %54 = vector.shape_cast %53 : vector<1x1x16xf32> to vector<1x16xf32>
    %c0_34 = arith.constant 0 : index
    %c0_35 = arith.constant 0 : index
    %c0_36 = arith.constant 0 : index
    %55 = vector.load %arg12[%c0_34, %c0_35, %c0_36] : memref<2x1x16xf32, #tpu.memory_space<vmem>>, vector<1x1x16xf32>
    %56 = vector.shape_cast %55 : vector<1x1x16xf32> to vector<1x16xf32>
    %cst_37 = arith.constant dense<0.000000e+00> : vector<8xf32>
    %57 = vector.multi_reduction <add>, %52, %cst_37 [1] : vector<8x16xf32> to vector<8xf32>
    %58 = vector.shape_cast %57 : vector<8xf32> to vector<8x1xf32>
    %cst_38 = arith.constant 1.600000e+01 : f32
    %59 = vector.broadcast %cst_38 : f32 to vector<8x1xf32>
    %60 = arith.divf %58, %59 : vector<8x1xf32>
    %61 = vector.broadcast %60 : vector<8x1xf32> to vector<8x16xf32>
    %62 = arith.subf %52, %61 : vector<8x16xf32>
    %63 = arith.mulf %62, %62 : vector<8x16xf32>
    %cst_39 = arith.constant dense<0.000000e+00> : vector<8xf32>
    %64 = vector.multi_reduction <add>, %63, %cst_39 [1] : vector<8x16xf32> to vector<8xf32>
    %65 = vector.shape_cast %64 : vector<8xf32> to vector<8x1xf32>
    %cst_40 = arith.constant 1.600000e+01 : f32
    %66 = vector.broadcast %cst_40 : f32 to vector<8x1xf32>
    %67 = arith.divf %65, %66 : vector<8x1xf32>
    %68 = vector.broadcast %60 : vector<8x1xf32> to vector<8x16xf32>
    %69 = arith.subf %52, %68 : vector<8x16xf32>
    %cst_41 = arith.constant 9.99999974E-6 : f32
    %70 = vector.broadcast %cst_41 : f32 to vector<8x1xf32>
    %71 = arith.addf %67, %70 : vector<8x1xf32>
    %72 = math.rsqrt %71 : vector<8x1xf32>
    %73 = vector.broadcast %72 : vector<8x1xf32> to vector<8x16xf32>
    %74 = arith.mulf %69, %73 : vector<8x16xf32>
    %75 = vector.broadcast %54 : vector<1x16xf32> to vector<8x16xf32>
    %76 = arith.mulf %74, %75 : vector<8x16xf32>
    %77 = vector.broadcast %56 : vector<1x16xf32> to vector<8x16xf32>
    %78 = arith.addf %76, %77 : vector<8x16xf32>
    %79 = arith.negf %78 : vector<8x16xf32>
    %80 = math.exp %79 : vector<8x16xf32>
    %cst_42 = arith.constant 1.000000e+00 : f32
    %81 = vector.broadcast %cst_42 : f32 to vector<8x16xf32>
    %82 = arith.addf %81, %80 : vector<8x16xf32>
    %83 = arith.divf %81, %82 : vector<8x16xf32>
    %84 = arith.mulf %78, %83 : vector<8x16xf32>
    %85 = vector.extract_strided_slice %41 {offsets = [0, 0], sizes = [16, 128], strides = [1, 1]} : vector<32x128xf32> to vector<16x128xf32>
    %cst_43 = arith.constant dense<0.000000e+00> : vector<8x128xf32>
    %86 = tpu.matmul %84, %85, %cst_43 {dimension_numbers = #tpu.dot_dimension_numbers<[1], [0], [0], [1], [0, 0, 1, 1], [], []>} : vector<8x16xf32>, vector<16x128xf32>, vector<8x128xf32> -> vector<8x128xf32>
    %c0_44 = arith.constant 0 : index
    %c1 = arith.constant 1 : index
    %87 = memref.load %arg1[%c0_44, %c1] : memref<1x2xf32, #tpu.memory_space<smem>>
    %88 = vector.extract_strided_slice %40 {offsets = [0, 16], sizes = [8, 16], strides = [1, 1]} : vector<8x32xf32> to vector<8x16xf32>
    %89 = vector.broadcast %87 : f32 to vector<8x16xf32>
    %90 = arith.mulf %88, %89 : vector<8x16xf32>
    %c1_45 = arith.constant 1 : index
    %c0_46 = arith.constant 0 : index
    %c0_47 = arith.constant 0 : index
    %91 = vector.load %arg9[%c1_45, %c0_46, %c0_47] : memref<2x16x16xf32, #tpu.memory_space<vmem>>, vector<1x16x16xf32>
    %92 = vector.shape_cast %91 : vector<1x16x16xf32> to vector<16x16xf32>
    %cst_48 = arith.constant dense<0.000000e+00> : vector<8x16xf32>
    %93 = tpu.matmul %90, %92, %cst_48 {dimension_numbers = #tpu.dot_dimension_numbers<[1], [0], [0], [1], [0, 0, 1, 1], [], []>} : vector<8x16xf32>, vector<16x16xf32>, vector<8x16xf32> -> vector<8x16xf32>
    %c1_49 = arith.constant 1 : index
    %c0_50 = arith.constant 0 : index
    %c0_51 = arith.constant 0 : index
    %94 = vector.load %arg10[%c1_49, %c0_50, %c0_51] : memref<2x1x16xf32, #tpu.memory_space<vmem>>, vector<1x1x16xf32>
    %95 = vector.shape_cast %94 : vector<1x1x16xf32> to vector<1x16xf32>
    %96 = vector.broadcast %95 : vector<1x16xf32> to vector<8x16xf32>
    %97 = arith.addf %93, %96 : vector<8x16xf32>
    %c1_52 = arith.constant 1 : index
    %c0_53 = arith.constant 0 : index
    %c0_54 = arith.constant 0 : index
    %98 = vector.load %arg11[%c1_52, %c0_53, %c0_54] : memref<2x1x16xf32, #tpu.memory_space<vmem>>, vector<1x1x16xf32>
    %99 = vector.shape_cast %98 : vector<1x1x16xf32> to vector<1x16xf32>
    %c1_55 = arith.constant 1 : index
    %c0_56 = arith.constant 0 : index
    %c0_57 = arith.constant 0 : index
    %100 = vector.load %arg12[%c1_55, %c0_56, %c0_57] : memref<2x1x16xf32, #tpu.memory_space<vmem>>, vector<1x1x16xf32>
    %101 = vector.shape_cast %100 : vector<1x1x16xf32> to vector<1x16xf32>
    %cst_58 = arith.constant dense<0.000000e+00> : vector<8xf32>
    %102 = vector.multi_reduction <add>, %97, %cst_58 [1] : vector<8x16xf32> to vector<8xf32>
    %103 = vector.shape_cast %102 : vector<8xf32> to vector<8x1xf32>
    %cst_59 = arith.constant 1.600000e+01 : f32
    %104 = vector.broadcast %cst_59 : f32 to vector<8x1xf32>
    %105 = arith.divf %103, %104 : vector<8x1xf32>
    %106 = vector.broadcast %105 : vector<8x1xf32> to vector<8x16xf32>
    %107 = arith.subf %97, %106 : vector<8x16xf32>
    %108 = arith.mulf %107, %107 : vector<8x16xf32>
    %cst_60 = arith.constant dense<0.000000e+00> : vector<8xf32>
    %109 = vector.multi_reduction <add>, %108, %cst_60 [1] : vector<8x16xf32> to vector<8xf32>
    %110 = vector.shape_cast %109 : vector<8xf32> to vector<8x1xf32>
    %cst_61 = arith.constant 1.600000e+01 : f32
    %111 = vector.broadcast %cst_61 : f32 to vector<8x1xf32>
    %112 = arith.divf %110, %111 : vector<8x1xf32>
    %113 = vector.broadcast %105 : vector<8x1xf32> to vector<8x16xf32>
    %114 = arith.subf %97, %113 : vector<8x16xf32>
    %cst_62 = arith.constant 9.99999974E-6 : f32
    %115 = vector.broadcast %cst_62 : f32 to vector<8x1xf32>
    %116 = arith.addf %112, %115 : vector<8x1xf32>
    %117 = math.rsqrt %116 : vector<8x1xf32>
    %118 = vector.broadcast %117 : vector<8x1xf32> to vector<8x16xf32>
    %119 = arith.mulf %114, %118 : vector<8x16xf32>
    %120 = vector.broadcast %99 : vector<1x16xf32> to vector<8x16xf32>
    %121 = arith.mulf %119, %120 : vector<8x16xf32>
    %122 = vector.broadcast %101 : vector<1x16xf32> to vector<8x16xf32>
    %123 = arith.addf %121, %122 : vector<8x16xf32>
    %124 = arith.negf %123 : vector<8x16xf32>
    %125 = math.exp %124 : vector<8x16xf32>
    %cst_63 = arith.constant 1.000000e+00 : f32
    %126 = vector.broadcast %cst_63 : f32 to vector<8x16xf32>
    %127 = arith.addf %126, %125 : vector<8x16xf32>
    %128 = arith.divf %126, %127 : vector<8x16xf32>
    %129 = arith.mulf %123, %128 : vector<8x16xf32>
    %130 = vector.extract_strided_slice %41 {offsets = [16, 0], sizes = [16, 128], strides = [1, 1]} : vector<32x128xf32> to vector<16x128xf32>
    %cst_64 = arith.constant dense<0.000000e+00> : vector<8x128xf32>
    %131 = tpu.matmul %129, %130, %cst_64 {dimension_numbers = #tpu.dot_dimension_numbers<[1], [0], [0], [1], [0, 0, 1, 1], [], []>} : vector<8x16xf32>, vector<16x128xf32>, vector<8x128xf32> -> vector<8x128xf32>
    %132 = arith.addf %86, %131 : vector<8x128xf32>
    %c0_65 = arith.constant 0 : index
    %c0_66 = arith.constant 0 : index
    %133 = vector.load %arg14[%c0_65, %c0_66] : memref<1x128xf32, #tpu.memory_space<vmem>>, vector<1x128xf32>
    %134 = vector.broadcast %133 : vector<1x128xf32> to vector<8x128xf32>
    %135 = arith.addf %132, %134 : vector<8x128xf32>
    %c0_67 = arith.constant 0 : index
    %c0_68 = arith.constant 0 : index
    %136 = vector.load %arg15[%c0_67, %c0_68] : memref<8x128xf32, #tpu.memory_space<vmem>>, vector<8x128xf32>
    tpu.vector_store %arg15[%c0_67, %c0_68], %135 {strides = array<i32>} : memref<8x128xf32, #tpu.memory_space<vmem>>, vector<8x128xf32>,
    return
  }
  func.func @transform_0(%arg0: i32) -> (i32, i32) {
    %c0_i32 = arith.constant 0 : i32
    %c0_i32_0 = arith.constant 0 : i32
    %c0_i32_1 = arith.constant 0 : i32
    return %c0_i32, %c0_i32_0 : i32, i32
  }
  func.func @transform_1(%arg0: i32) -> (i32, i32) {
    %c0_i32 = arith.constant 0 : i32
    %c0_i32_0 = arith.constant 0 : i32
    return %arg0, %c0_i32 : i32, i32
  }
  func.func @transform_2(%arg0: i32) -> (i32, i32) {
    %c0_i32 = arith.constant 0 : i32
    %c0_i32_0 = arith.constant 0 : i32
    %c0_i32_1 = arith.constant 0 : i32
    return %c0_i32, %c0_i32_0 : i32, i32
  }
  func.func @transform_3(%arg0: i32) -> (i32, i32) {
    %c0_i32 = arith.constant 0 : i32
    %c0_i32_0 = arith.constant 0 : i32
    %c0_i32_1 = arith.constant 0 : i32
    return %c0_i32, %c0_i32_0 : i32, i32
  }
  func.func @transform_4(%arg0: i32) -> (i32, i32) {
    %c0_i32 = arith.constant 0 : i32
    %c0_i32_0 = arith.constant 0 : i32
    %c0_i32_1 = arith.constant 0 : i32
    return %c0_i32, %c0_i32_0 : i32, i32
  }
  func.func @transform_5(%arg0: i32) -> (i32, i32) {
    %c0_i32 = arith.constant 0 : i32
    %c0_i32_0 = arith.constant 0 : i32
    %c0_i32_1 = arith.constant 0 : i32
    return %c0_i32, %c0_i32_0 : i32, i32
  }
  func.func @transform_6(%arg0: i32) -> (i32, i32) {
    %c0_i32 = arith.constant 0 : i32
    %c0_i32_0 = arith.constant 0 : i32
    %c0_i32_1 = arith.constant 0 : i32
    return %c0_i32, %c0_i32_0 : i32, i32
  }
  func.func @transform_7(%arg0: i32) -> (i32, i32) {
    %c0_i32 = arith.constant 0 : i32
    %c0_i32_0 = arith.constant 0 : i32
    %c0_i32_1 = arith.constant 0 : i32
    return %c0_i32, %c0_i32_0 : i32, i32
  }
  func.func @transform_8(%arg0: i32) -> (i32, i32, i32) {
    %c0_i32 = arith.constant 0 : i32
    %c0_i32_0 = arith.constant 0 : i32
    %c0_i32_1 = arith.constant 0 : i32
    %c0_i32_2 = arith.constant 0 : i32
    return %c0_i32, %c0_i32_0, %c0_i32_1 : i32, i32, i32
  }
  func.func @transform_9(%arg0: i32) -> (i32, i32, i32) {
    %c0_i32 = arith.constant 0 : i32
    %c0_i32_0 = arith.constant 0 : i32
    %c0_i32_1 = arith.constant 0 : i32
    %c0_i32_2 = arith.constant 0 : i32
    return %c0_i32, %c0_i32_0, %c0_i32_1 : i32, i32, i32
  }
  func.func @transform_10(%arg0: i32) -> (i32, i32, i32) {
    %c0_i32 = arith.constant 0 : i32
    %c0_i32_0 = arith.constant 0 : i32
    %c0_i32_1 = arith.constant 0 : i32
    %c0_i32_2 = arith.constant 0 : i32
    return %c0_i32, %c0_i32_0, %c0_i32_1 : i32, i32, i32
  }
  func.func @transform_11(%arg0: i32) -> (i32, i32, i32) {
    %c0_i32 = arith.constant 0 : i32
    %c0_i32_0 = arith.constant 0 : i32
    %c0_i32_1 = arith.constant 0 : i32
    %c0_i32_2 = arith.constant 0 : i32
    return %c0_i32, %c0_i32_0, %c0_i32_1 : i32, i32, i32
  }
  func.func @transform_12(%arg0: i32) -> (i32, i32) {
    %c0_i32 = arith.constant 0 : i32
    %c0_i32_0 = arith.constant 0 : i32
    %c0_i32_1 = arith.constant 0 : i32
    return %c0_i32, %c0_i32_0 : i32, i32
  }
  func.func @transform_13(%arg0: i32) -> (i32, i32) {
    %c0_i32 = arith.constant 0 : i32
    %c0_i32_0 = arith.constant 0 : i32
    %c0_i32_1 = arith.constant 0 : i32
    return %c0_i32, %c0_i32_0 : i32, i32
  }
  func.func @transform_14(%arg0: i32) -> (i32, i32) {
    %c0_i32 = arith.constant 0 : i32
    %c0_i32_0 = arith.constant 0 : i32
    return %arg0, %c0_i32 : i32, i32
  }
}

</mosaic_0001>

<bundles_post_ra>
// kernel: tpu_custom_call.1
= control target key start
LH: loop header
LB: loop body
LE: loop exit
PB: predicated region body
PF: predicated region fallthrough
CT: control target
= control target key end

     0   :  { %19 = vsyncpa [#allocation5], 0  ;;  %s1308_s0 = inlined_call_operand.hbm [shape: f32[1,2], index: 0, kind: input, shape index: {}]   ;;  %s1309_s1 = inlined_call_operand.hbm [shape: f32[8,32], index: 1, kind: input, shape index: {}]   ;;  %s1310_s2 = inlined_call_operand.vmem [shape: f32[32,16], index: 2, kind: input, shape index: {}]   ;;  %s1311_s3 = inlined_call_operand.hbm [shape: f32[1,16], index: 3, kind: input, shape index: {}]   ;;  %s1312_s4 = inlined_call_operand.hbm [shape: f32[1,16], index: 4, kind: input, shape index: {}]   ;;  %s1313_s5 = inlined_call_operand.hbm [shape: f32[1,16], index: 5, kind: input, shape index: {}]   ;;  %s1314_s6 = inlined_call_operand.hbm [shape: f32[16,32], index: 6, kind: input, shape index: {}]   ;;  %s1315_s7 = inlined_call_operand.vmem [shape: f32[1,32], index: 7, kind: input, shape index: {}]   ;;  %s1316_s8 = inlined_call_operand.vmem [shape: f32[2,16,16], index: 8, kind: input, shape index: {}]   ;;  %s1317_s9 = inlined_call_operand.vmem [shape: f32[2,1,16], index: 9, kind: input, shape index: {}]   ;;  %s1318_s10 = inlined_call_operand.vmem [shape: f32[2,1,16], index: 10, kind: input, shape index: {}]   ;;  %s1319_s11 = inlined_call_operand.vmem [shape: f32[2,1,16], index: 11, kind: input, shape index: {}]   ;;  %s1320_s12 = inlined_call_operand.vmem [shape: f32[32,128], index: 12, kind: input, shape index: {}]   ;;  %s1321_s13 = inlined_call_operand.vmem [shape: f32[1,128], index: 13, kind: input, shape index: {}]   ;;  %s1322_s14 = inlined_call_operand.hbm [shape: f32[8,128], index: 14, kind: output, shape index: {}]  }
   0x1   :  { %20 = vsyncpa [#allocation3], 0 }
   0x2   :  { %21 = vsyncpa [#allocation8], 0 }
   0x3   :  { %22 = vsyncpa [#allocation11], 0 }
   0x4   :  { %23 = vsyncpa [#allocation4], 0  ;;  %s1046_s29 = smov [#allocation7]   ;;  %s1047_s15 = smov [#allocation10]  }
   0x5   :  { %s50_s30 = sshll.u32 %s1046_s29, 4  ;;  %s70_s16 = sshll.u32 %s1047_s15, 4  ;;  %s51_s30 = int_to_ptr.vmem [resolvable:$true] %s50_s30  ;;  %s71_s16 = int_to_ptr.vmem [resolvable:$true] %s70_s16 }
   0x6   :  { %s894_s19 = scalar_lea.hbm %s1311_s3, 16 }
   0x7   :  { %p895_p0 = scmp.ne.s32.totalorder %s1311_s3, %s894_s19  ;;  %p898_p1 = scmp.lt.u32.totalorder %s894_s19, %s1311_s3 }
   0x9   :  { %p900_p2 = pnand %p898_p1, %p895_p0 }
   0xb   :  { %903 = shalt.err (!%p900_p2)
}
   0xc   :  { %s904_s24 = scalar_lea.vmem %s51_s30, 16  ;;  %s908_s25 = scalar_lea.vmem %s51_s30, 32 }
   0xd   :  { %p905_p3 = scmp.ne.s32.totalorder %s51_s30, %s904_s24  ;;  %p909_p4 = scmp.lt.s32.totalorder %s51_s30, %s51_s30 }
   0xe   :  { %p910_p5 = scmp.lt.s32.totalorder %s908_s25, %s904_s24 }
  0x10   :  { %p911_p6 = por %p910_p5, %p909_p4 }
  0x12   :  { %p912_p7 = pnand %p911_p6, %p905_p3 }
  0x14   :  { %915 = shalt.err (!%p912_p7)
}
  0x15   :  { %53 = dma.hbm_to_vmem [thread:$0]  %s1311_s3, 16, %s51_s30, [#allocation8]  }
  0x16   :  { %s916_s15 = scalar_lea.hbm %s1313_s5, 16 }
  0x17   :  { %p917_p8 = scmp.ne.s32.totalorder %s1313_s5, %s916_s15  ;;  %p920_p9 = scmp.lt.u32.totalorder %s916_s15, %s1313_s5 }
  0x19   :  { %p922_p10 = pnand %p920_p9, %p917_p8 }
  0x1b   :  { %925 = shalt.err (!%p922_p10)
}
  0x1c   :  { %s926_s21 = scalar_lea.vmem %s71_s16, 16  ;;  %s930_s22 = scalar_lea.vmem %s71_s16, 32 }
  0x1d   :  { %p927_p11 = scmp.ne.s32.totalorder %s71_s16, %s926_s21  ;;  %p931_p12 = scmp.lt.s32.totalorder %s71_s16, %s71_s16 }
  0x1e   :  { %p932_p13 = scmp.lt.s32.totalorder %s930_s22, %s926_s21 }
  0x20   :  { %p933_p0 = por %p932_p13, %p931_p12 }
  0x22   :  { %p934_p1 = pnand %p933_p0, %p927_p11 }
  0x24   :  { %937 = shalt.err (!%p934_p1)
}
  0x25   :  { %73 = dma.hbm_to_vmem [thread:$0]  %s1313_s5, 16, %s71_s16, [#allocation11]  }
  0x26   :  { %s938_s25 = scalar_lea.hbm %s1308_s0, 16 }
  0x27   :  { %p939_p2 = scmp.ne.s32.totalorder %s1308_s0, %s938_s25  ;;  %p942_p3 = scmp.lt.u32.totalorder %s938_s25, %s1308_s0 }
  0x29   :  { %p944_p4 = pnand %p942_p3, %p939_p2 }
  0x2b   :  { %947 = shalt.err (!%p944_p4)
}
  0x2c   :  { %s1048_s15 = smov [#allocation2]   ;;  %s1049_s5 = smov [#allocation6]  }
  0x2d   :  { %31 = dma.hbm_to_smem %s1308_s0, 16, %s1048_s15, [#allocation5]  }
  0x2e   :  { %s38_s16 = sshll.u32 %s1049_s5, 4  ;;  %s1050_s19 = smov [#allocation9]   ;;  %s39_s16 = int_to_ptr.vmem [resolvable:$true] %s38_s16 }
  0x2f   :  { %s60_s20 = sshll.u32 %s1050_s19, 4  ;;  %s948_s3 = scalar_lea.hbm %s1309_s1, 128  ;;  %s61_s20 = int_to_ptr.vmem [resolvable:$true] %s60_s20 }
  0x30   :  { %p949_p5 = scmp.ne.s32.totalorder %s1309_s1, %s948_s3  ;;  %p952_p6 = scmp.lt.u32.totalorder %s948_s3, %s1309_s1 }
  0x32   :  { %p954_p7 = pnand %p952_p6, %p949_p5 }
  0x34   :  { %957 = shalt.err (!%p954_p7)
}
  0x35   :  { %s958_s0 = scalar_lea.vmem %s39_s16, 128  ;;  %p963_p9 = scmp.lt.s32.totalorder %s39_s16, %s39_s16 }
  0x36   :  { %p959_p8 = scmp.ne.s32.totalorder %s39_s16, %s958_s0  ;;  %p964_p10 = scmp.lt.s32.totalorder %s958_s0, %s958_s0 }
  0x38   :  { %p965_p11 = por %p964_p10, %p963_p9 }
  0x3a   :  { %p966_p12 = pnand %p965_p11, %p959_p8 }
  0x3c   :  { %969 = shalt.err (!%p966_p12)
}
  0x3d   :  { %41 = dma.hbm_to_vmem [thread:$0]  %s1309_s1, 128, %s39_s16, [#allocation3]  }
  0x3e   :  { %s970_s15 = scalar_lea.hbm %s1312_s4, 16 }
  0x3f   :  { %p971_p13 = scmp.ne.s32.totalorder %s1312_s4, %s970_s15  ;;  %p974_p0 = scmp.lt.u32.totalorder %s970_s15, %s1312_s4 }
  0x41   :  { %p976_p1 = pnand %p974_p0, %p971_p13 }
  0x43   :  { %979 = shalt.err (!%p976_p1)
}
  0x44   :  { %s980_s21 = scalar_lea.vmem %s61_s20, 16  ;;  %s984_s22 = scalar_lea.vmem %s61_s20, 32 }
  0x45   :  { %p981_p2 = scmp.ne.s32.totalorder %s61_s20, %s980_s21  ;;  %p985_p3 = scmp.lt.s32.totalorder %s61_s20, %s61_s20 }
  0x46   :  { %p986_p4 = scmp.lt.s32.totalorder %s984_s22, %s980_s21 }
  0x48   :  { %p987_p5 = por %p986_p4, %p985_p3 }
  0x4a   :  { %p988_p6 = pnand %p987_p5, %p981_p2 }
  0x4c   :  { %991 = shalt.err (!%p988_p6)
}
  0x4d   :  { %63 = dma.hbm_to_vmem [thread:$0]  %s1312_s4, 16, %s61_s20, [#allocation8]  }
  0x4e   :  { %s1051_s3 = smov [#allocation12]   ;;  %s992_s25 = scalar_lea.hbm %s1314_s6, 256 }
  0x4f   :  { %s79_s30 = sshll.u32 %s1051_s3, 4  ;;  %p993_p7 = scmp.ne.s32.totalorder %s1314_s6, %s992_s25  ;;  %s80_s30 = int_to_ptr.vmem [resolvable:$true] %s79_s30 }
  0x50   :  { %p996_p8 = scmp.lt.u32.totalorder %s992_s25, %s1314_s6 }
  0x52   :  { %p998_p9 = pnand %p996_p8, %p993_p7 }
  0x54   :  { %1001 = shalt.err (!%p998_p9)
}
  0x55   :  { %s1002_s29 = scalar_lea.vmem %s80_s30, 256  ;;  %p1007_p11 = scmp.lt.s32.totalorder %s80_s30, %s80_s30 }
  0x56   :  { %p1003_p10 = scmp.ne.s32.totalorder %s80_s30, %s1002_s29  ;;  %p1008_p12 = scmp.lt.s32.totalorder %s1002_s29, %s1002_s29 }
  0x58   :  { %p1009_p13 = por %p1008_p12, %p1007_p11 }
  0x5a   :  { %p1010_p0 = pnand %p1009_p13, %p1003_p10 }
  0x5c   :  { %1013 = shalt.err (!%p1010_p0)
}
  0x5d   :  { %s1052_s4 = smov 128   ;;  %s1053_s20 = smov 8  }
  0x5e   :  { %85 = dma.hbm_to_vmem [thread:$0]  %s1314_s6, 256, %s80_s30, [#allocation11], %s1052_s4, %s1052_s4, %s1053_s20  }
  0x5f   :  { %1036 = dma.done.wait [#allocation5], 16  }
  0x60   :  { %1037 = vsyncadd [#allocation5], 4294967280 }
  0x61   :  { %1038 = dma.done.wait [#allocation3], 128  }
  0x62   :  { %1039 = vsyncadd [#allocation3], 4294967168 }
  0x63   :  { %1040 = dma.done.wait [#allocation8], 32  }
  0x64   :  { %1041 = vsyncadd [#allocation8], 4294967264 }
  0x65   :  { %1042 = dma.done.wait [#allocation11], 272  }
  0x66   :  { %1043 = vsyncadd [#allocation11], 4294967024 }
  0x67   :  { %118 = sfence }
  0x68   :  { %v120_v0 = vld [vmem:[%s1310_s2] sm:$0xff]  ;;  %v121_v1 = vld [vmem:[%s1310_s2 + $0x8] sm:$0xff]  ;;  %v122_v2 = vld [vmem:[%s1310_s2 + $0x10] sm:$0xff]  ;;  %v1054_v3 = vmov 0.0|0.0   ;;  %vm1055_vm0 = vmmov 0   ;;  %v1056_v6 = vmov 0.0  }
  0x69   :  { %842 = vmatprep.subr.bf16.mxu0 %v1054_v3  ;;  %v843_v4 = vpack.c.bf16 %v121_v1, %v120_v0  ;;  %v123_v5 = vld [vmem:[%s1310_s2 + $0x18] sm:$0xff]  ;;  %804 = vmatprep.mubr.msk.f32.mxu0 %vm1055_vm0, %v1056_v6  ;;  %v119_v8 = vld [vmem:[#allocation6] sm:$0xff]  ;;  %vm131_vm1 = vcmask 261120   ;;  %v750_v9 = vld [vmem:[#allocation7] ss:$0 sm:$0xff]  ;;  %vm207_vm2 = vcmask 130048  }
  0x6a   :  { %848 = vmatprep.subr.bf16.mxu1 %v1054_v3  ;;  %811 = vmatprep.mubr.msk.f32.mxu1 %vm1055_vm0, %v1056_v6  ;;  %v846_v7 = vpack.c.bf16 %v123_v5, %v122_v2  ;;  %v243_v19 = vld [vmem:[#allocation12] sm:$0xff]  ;;  %v244_v20 = vld [vmem:[#allocation12 + $0x8] sm:$0xff]  ;;  %v752_v26 = vld [vmem:[#allocation9] ss:$0 sm:$0xff]  ;;  %s329_s27 = sld [smem:[#allocation2]]  ;;  %s762_s28 = sld [smem:[#allocation2 + $0x1]] }
  0x6b   :  { %844 = vmatpush3.bf16.msra.mxu0 %v843_v4  ;;  %v849_v21 = vpack.c.bf16 %v244_v20, %v243_v19  ;;  %v753_v28 = vld [vmem:[#allocation10] ss:$0 sm:$0xff]  ;;  %v332_v36 = vld [vmem:[%s1316_s8] sm:$0xff]  ;;  %v763_v39 = vld [vmem:[%s1316_s8 + $0x10] sm:$0xff]  ;;  %s1057_s20 = smov 112   ;;  %s1058_s26 = smov [#allocation13]  }
  0x6c   :  { %845 = vmatprep.subr.bf16.mxu0 %v1054_v3  ;;  %v333_v37 = vld [vmem:[%s1316_s8 + $0x8] sm:$0xff]  ;;  %v764_v40 = vld [vmem:[%s1316_s8 + $0x18] sm:$0xff]  ;;  %v755_v42 = vld [vmem:[%s1315_s7] ss:$0 sm:$0xff] }
  0x6d   :  { %850 = vmatpush3.bf16.msra.mxu1 %v849_v21  ;;  %v852_v38 = vpack.c.bf16 %v333_v37, %v332_v36  ;;  %v855_v41 = vpack.c.bf16 %v764_v40, %v763_v39  ;;  %v757_v51 = vld [vmem:[%s1317_s9] ss:$0 sm:$0xff]  ;;  %v766_v56 = vld [vmem:[%s1317_s9 + $0x1] ss:$0 sm:$0xff] }
  0x6e   :  { %851 = vmatprep.subr.bf16.mxu1 %v1054_v3  ;;  %v325_v2 = vld [vmem:[%s1320_s12] sm:$0xff] }
  0x6f   :  { %847 = vmatpush3.bf16.msra.mxu0 %v846_v7  ;;  %v760_v19 = vld [vmem:[%s1319_s11] ss:$0 sm:$0xff] }
  0x70   :  { %854 = vmatprep.subr.bf16.mxu0 %v1054_v3  ;;  %v330_v44 = vstv %s329_s27  ;;  %v451_v45 = vstv %s762_s28 }
  0x72   :  { %805 = vmatmul.mubr.msk.f32.vlgmr.msra.gmra.mrb[0].mxu0 %vm131_vm1, %v119_v8 }
  0x73   :  { %825 = vmatprep.mubr.msk.f32.mxu0 %vm1055_vm0, %v1056_v6  ;;  %856 = vmatpush3.bf16.msra.mxu0 %v855_v41 }
  0x74   :  { %860 = vmatprep.subr.bf16.mxu0 %v1054_v3 }
 0x145   :  { %v201_v10 = vpop.f32.mrb[0].mxu0 }
 0x146   :  { %v202_v11 = vadd.f32 %v750_v9, %v201_v10  ;;  %v806_v12 = vpop.f32.mrb[1].mxu0 }
 0x148   :  { %v208_v13 = vsel %vm207_vm2, %v202_v11, 0.0 }
 0x149   :  { %209 = vadd.xlane.f32.xlu0 %v208_v13  ;;  %v327_v13 = vld [vmem:[%s1320_s12 + $0x10] sm:$0xff] }
 0x1d6   :  { %v210_v14 = vpop.xlane.xlu0 %209 }
 0x1d7   :  { %v212_v15 = vmul.f32 0.0625, %v210_v14  ;;  %v328_v14 = vld [vmem:[%s1320_s12 + $0x18] sm:$0xff] }
 0x1d9   :  { %v213_v16 = vsub.f32 %v202_v11, %v212_v15  ;;  %v858_v15 = vpack.c.bf16 %v328_v14, %v327_v13 }
 0x1db   :  { %v214_v17 = vmul.f32 %v213_v16, %v213_v16 }
 0x1dd   :  { %v215_v18 = vsel %vm207_vm2, %v214_v17, 0.0  ;;  %v759_v17 = vld [vmem:[%s1318_s10] ss:$0 sm:$0xff] }
 0x1de   :  { %216 = vadd.xlane.f32.xlu0 %v215_v18 }
 0x26b   :  { %v217_v22 = vpop.xlane.xlu0 %216 }
 0x26c   :  { %v218_v23 = vmul.f32 0.0625, %v217_v22 }
 0x26e   :  { %v219_v24 = vadd.f32 1e-05, %v218_v23 }
 0x270   :  { %876 = vrsqrt.f32 %v219_v24 }
 0x27a   :  { %v877_v25 = vpop.eup %876 }
 0x27b   :  { %v221_v27 = vmul.f32 %v877_v25, %v213_v16 }
 0x27d   :  { %v228_v29 = vmul.f32 %v752_v26, %v221_v27 }
 0x27f   :  { %v235_v30 = vadd.f32 %v753_v28, %v228_v29 }
 0x281   :  { %v754_v31 = vmul.f32 -1.442695, %v235_v30 }
 0x283   :  { %878 = vpow2.f32 %v754_v31  ;;  %v770_v31 = vld [vmem:[%s1318_s10 + $0x1] ss:$0 sm:$0xff] }
 0x28d   :  { %v879_v32 = vpop.eup %878 }
 0x28e   :  { %v239_v33 = vadd.f32 1.0, %v879_v32 }
 0x290   :  { %880 = vrcp.f32 %v239_v33  ;;  %v771_v33 = vld [vmem:[%s1319_s11 + $0x1] ss:$0 sm:$0xff]  ;;  %s738_s11 = sshll.u32 %s1058_s26, 4  ;;  %s739_s11 = int_to_ptr.vmem [resolvable:$true] %s738_s11 }
 0x291   :  { %s1014_s27 = scalar_lea.vmem %s739_s11, 128  ;;  %p1019_p2 = scmp.lt.s32.totalorder %s739_s11, %s739_s11 }
 0x292   :  { %p1015_p1 = scmp.ne.s32.totalorder %s739_s11, %s1014_s27  ;;  %p1020_p3 = scmp.lt.s32.totalorder %s1014_s27, %s1014_s27 }
 0x294   :  { %p1021_p4 = por %p1020_p3, %p1019_p2 }
 0x296   :  { %p1022_p5 = pnand %p1021_p4, %p1015_p1 }
 0x29a   :  { %v881_v34 = vpop.eup %880 }
 0x29b   :  { %v242_v35 = vmul.f32 %v881_v34, %v235_v30 }
 0x29d   :  { %812 = vmatmul.mubr.msk.f32.vlgmr.msra.gmra.mrb[0].mxu1 %vm207_vm2, %v242_v35 }
 0x29e   :  { %818 = vmatprep.mubr.msk.f32.mxu1 %vm1055_vm0, %v1056_v6  ;;  %853 = vmatpush3.bf16.msra.mxu1 %v852_v38 }
 0x29f   :  { %857 = vmatprep.subr.bf16.mxu1 %v1054_v3  ;;  %v326_v3 = vld [vmem:[%s1320_s12 + $0x8] sm:$0xff] }
 0x2a0   :  { %v861_v4 = vpack.c.bf16 %v326_v3, %v325_v2 }
 0x370   :  { %v321_v43 = vpop.f32.mrb[0].mxu1 }
 0x371   :  { %v322_v46 = vadd.f32 %v755_v42, %v321_v43  ;;  %v813_v47 = vpop.f32.mrb[1].mxu1 }
 0x373   :  { %v331_v48 = vmul.f32 %v330_v44, %v322_v46  ;;  %v452_v49 = vmul.f32 %v451_v45, %v322_v46  ;;  %v775_v44 = vld [vmem:[%s1321_s13] ss:$0 sm:$0xff] }
 0x375   :  { %465 = vrot.lane.b32.xlu1 %v452_v49, %s1057_s20  ;;  %819 = vmatmul.mubr.msk.f32.vlgmr.msra.gmra.mrb[2].mxu1 %vm207_vm2, %v331_v48 }
 0x376   :  { %832 = vmatprep.mubr.msk.f32.mxu1 %vm1055_vm0, %v1056_v6  ;;  %859 = vmatpush3.bf16.msra.mxu1 %v858_v15 }
 0x3e7   :  { %v466_v50 = vpop.permute.xlu1 %465 }
 0x3e8   :  { %826 = vmatmul.mubr.msk.f32.vlgmr.msra.gmra.mrb[2].mxu0 %vm207_vm2, %v466_v50 }
 0x3e9   :  { %839 = vmatprep.mubr.msk.f32.mxu0 %vm1055_vm0, %v1056_v6  ;;  %862 = vmatpush3.bf16.msra.mxu0 %v861_v4 }
 0x448   :  { %v410_v52 = vpop.f32.mrb[2].mxu1 }
 0x449   :  { %v411_v53 = vadd.f32 %v757_v51, %v410_v52  ;;  %v820_v54 = vpop.f32.mrb[3].mxu1 }
 0x44b   :  { %v416_v55 = vsel %vm207_vm2, %v411_v53, 0.0 }
 0x44c   :  { %417 = vadd.xlane.f32.xlu1 %v416_v55 }
 0x4bb   :  { %v535_v57 = vpop.f32.mrb[2].mxu0 }
 0x4bc   :  { %v536_v58 = vadd.f32 %v766_v56, %v535_v57  ;;  %v827_v59 = vpop.f32.mrb[3].mxu0 }
 0x4be   :  { %v543_v60 = vsel %vm207_vm2, %v536_v58, 0.0 }
 0x4bf   :  { %544 = vadd.xlane.f32.xlu0 %v543_v60 }
 0x4d9   :  { %v418_v61 = vpop.xlane.xlu1 %417 }
 0x4da   :  { %v419_v62 = vmul.f32 0.0625, %v418_v61 }
 0x4dc   :  { %v420_v63 = vsub.f32 %v411_v53, %v419_v62 }
 0x4de   :  { %v421_v0 = vmul.f32 %v420_v63, %v420_v63 }
 0x4e0   :  { %v422_v1 = vsel %vm207_vm2, %v421_v0, 0.0 }
 0x4e1   :  { %423 = vadd.xlane.f32.xlu0 %v422_v1 }
 0x54c   :  { %v545_v5 = vpop.xlane.xlu0 %544 }
 0x54d   :  { %v546_v6 = vmul.f32 0.0625, %v545_v5 }
 0x54f   :  { %v547_v7 = vsub.f32 %v536_v58, %v546_v6 }
 0x551   :  { %v548_v8 = vmul.f32 %v547_v7, %v547_v7 }
 0x553   :  { %v549_v9 = vsel %vm207_vm2, %v548_v8, 0.0 }
 0x554   :  { %550 = vadd.xlane.f32.xlu0 %v549_v9 }
 0x56e   :  { %v424_v10 = vpop.xlane.xlu0 %423 }
 0x56f   :  { %v425_v11 = vmul.f32 0.0625, %v424_v10 }
 0x571   :  { %v426_v12 = vadd.f32 1e-05, %v425_v11 }
 0x573   :  { %882 = vrsqrt.f32 %v426_v12 }
 0x57d   :  { %v883_v16 = vpop.eup %882 }
 0x57e   :  { %v428_v18 = vmul.f32 %v883_v16, %v420_v63 }
 0x580   :  { %v435_v20 = vmul.f32 %v759_v17, %v428_v18 }
 0x582   :  { %v442_v21 = vadd.f32 %v760_v19, %v435_v20 }
 0x584   :  { %v761_v22 = vmul.f32 -1.442695, %v442_v21 }
 0x586   :  { %884 = vpow2.f32 %v761_v22 }
 0x590   :  { %v885_v23 = vpop.eup %884 }
 0x591   :  { %v446_v24 = vadd.f32 1.0, %v885_v23 }
 0x593   :  { %886 = vrcp.f32 %v446_v24 }
 0x59d   :  { %v887_v25 = vpop.eup %886 }
 0x59e   :  { %v449_v26 = vmul.f32 %v887_v25, %v442_v21 }
 0x5a0   :  { %840 = vmatmul.mubr.msk.f32.vlgmr.msra.gmra.mrb[4].mxu0 %vm207_vm2, %v449_v26 }
 0x5e1   :  { %v551_v27 = vpop.xlane.xlu0 %550 }
 0x5e2   :  { %v552_v28 = vmul.f32 0.0625, %v551_v27 }
 0x5e4   :  { %v553_v29 = vadd.f32 1e-05, %v552_v28 }
 0x5e6   :  { %888 = vrsqrt.f32 %v553_v29 }
 0x5f0   :  { %v889_v30 = vpop.eup %888 }
 0x5f1   :  { %v555_v32 = vmul.f32 %v889_v30, %v547_v7 }
 0x5f3   :  { %v562_v34 = vmul.f32 %v770_v31, %v555_v32 }
 0x5f5   :  { %v569_v35 = vadd.f32 %v771_v33, %v562_v34 }
 0x5f7   :  { %v772_v36 = vmul.f32 -1.442695, %v569_v35 }
 0x5f9   :  { %890 = vpow2.f32 %v772_v36 }
 0x603   :  { %v891_v37 = vpop.eup %890 }
 0x604   :  { %v573_v38 = vadd.f32 1.0, %v891_v37 }
 0x606   :  { %892 = vrcp.f32 %v573_v38 }
 0x610   :  { %v893_v39 = vpop.eup %892 }
 0x611   :  { %v576_v40 = vmul.f32 %v893_v39, %v569_v35 }
 0x613   :  { %833 = vmatmul.mubr.msk.f32.vlgmr.msra.gmra.mrb[4].mxu1 %vm207_vm2, %v576_v40 }
 0x673   :  { %v719_v41 = vpop.f32.mrb[4].mxu0 }
 0x674   :  { %v841_v42 = vpop.f32.mrb[5].mxu0 }
 0x6e6   :  { %v646_v43 = vpop.f32.mrb[4].mxu1 }
 0x6e7   :  { %v720_v45 = vadd.f32 %v719_v41, %v646_v43  ;;  %v834_v46 = vpop.f32.mrb[5].mxu1 }
 0x6e9   :  { %v730_v47 = vadd.f32 %v775_v44, %v720_v45 }
 0x6eb   :  { %731 = vst [vmem:[#allocation13] sm:$0xff] %v730_v47 }
 0x6ec   :  { %1025 = shalt.err (!%p1022_p5)
}
 0x6ed   :  { %s1026_s4 = scalar_lea.hbm %s1322_s14, 128 }
 0x6ee   :  { %p1027_p6 = scmp.ne.s32.totalorder %s1322_s14, %s1026_s4  ;;  %p1030_p7 = scmp.lt.u32.totalorder %s1026_s4, %s1322_s14 }
 0x6f0   :  { %p1032_p8 = pnand %p1030_p7, %p1027_p6 }
 0x6f2   :  { %1035 = shalt.err (!%p1032_p8)
}
 0x6f3   :  { %741 = dma.vmem_to_hbm [thread:$0]  %s739_s11, 128, %s1322_s14, [#allocation4]  }
 0x6f4   :  { %1044 = dma.done.wait [#allocation4], 128  }
 0x6f5   :  { %1045 = vsyncadd [#allocation4], 4294967168 }
 0x6f6   :  { %745 = vsyncpa [#allocation3], 1 }
 0x6f7   :  { %746 = vsyncpa [#allocation8], 1 }
 0x6f8   :  { %747 = vsyncpa [#allocation11], 1 }
 0x6f9   :  { %748 = vsyncpa [#allocation4], 1 }
 0x6fa   :  { %749 = vsyncpa [#allocation5], 1 }

</bundles_post_ra>
